<compile_context>
chip_gen: v7x
topology: tpu7x:2x2x1
jax: 0.10.0
libtpu: 0.0.40
codegen_flags: <defaults>
</compile_context>

<pallas_src>
import functools

import jax
import jax.numpy as jnp
from jax.experimental import pallas as pl
from jax.experimental.pallas import tpu as pltpu


def _round_up(x: int, m: int) -> int:
    return ((x + m - 1) // m) * m


def _linear_head_kernel(x_ref, w_ref, b_ref, o_ref):
    """One (tm, C_pad) output tile: y = x @ W + b, f32 accumulation on the MXU."""
    acc = jnp.dot(x_ref[...], w_ref[...], preferred_element_type=jnp.float32)
    o_ref[...] = (acc + b_ref[...]).astype(o_ref.dtype)


@functools.partial(jax.jit, static_argnames=("tm", "compute_dtype"))
def linear_head(feats, w_t, bias, *, tm=256, compute_dtype=jnp.bfloat16):
    """y = feats @ w_t + bias.

    feats: (B, F) float32
    w_t:   (F, C) float32   (PyTorch Linear weight, stored transposed)
    bias:  (1, C) float32
    returns (B, C) float32
    """
    B, F = feats.shape
    F2, C = w_t.shape
    assert F == F2 and bias.shape == (1, C)

    cdt = jnp.dtype(compute_dtype)

    # Lane-dense output: pad class dim to a multiple of 128.
    C_pad = max(128, _round_up(C, 128))

    # Batch tile: multiple of 16 (bf16 sublane packing), no bigger than needed.
    tm_eff = min(int(tm), _round_up(B, 16))
    tm_eff = max(16, _round_up(tm_eff, 16))

    # VMEM budget (conservative for v7x's 64 MiB physical VMEM): shrink the
    # batch tile if the resident weight + double-buffered tiles would not fit.
    VMEM_BUDGET = 48 * 1024 * 1024

    def _vmem_estimate(t):
        w_bytes = F * C_pad * cdt.itemsize
        b_bytes = C_pad * 4
        tile_bytes = t * F * cdt.itemsize + t * C_pad * 4
        # Pallas double-buffers inputs/outputs; weight/bias index maps are
        # grid-invariant but budget 2x conservatively, plus headroom.
        return 2 * (w_bytes + b_bytes + tile_bytes) + (1 << 20)

    while _vmem_estimate(tm_eff) > VMEM_BUDGET and tm_eff > 16:
        tm_eff = max(16, _round_up(tm_eff // 2, 16))

    B_pad = _round_up(B, tm_eff)

    # Pad + cast operands (zero padding rows/cols are sliced off afterwards).
    x = jnp.pad(feats, ((0, B_pad - B), (0, 0))).astype(cdt)
    w = jnp.pad(w_t, ((0, 0), (0, C_pad - C))).astype(cdt)
    b = jnp.pad(bias, ((0, 0), (0, C_pad - C))).astype(jnp.float32)

    grid = (B_pad // tm_eff,)

    cost = pl.CostEstimate(
        flops=2 * B_pad * F * C_pad,
        transcendentals=0,
        bytes_accessed=(
            B_pad * F * cdt.itemsize          # feats
            + F * C_pad * cdt.itemsize        # weight (resident)
            + C_pad * 4                       # bias
            + B_pad * C_pad * 4               # output
        ),
    )

    out = pl.pallas_call(
        _linear_head_kernel,
        out_shape=jax.ShapeDtypeStruct((B_pad, C_pad), jnp.float32),
        grid_spec=pltpu.PrefetchScalarGridSpec(
            num_scalar_prefetch=0,
            grid=grid,
            in_specs=[
                pl.BlockSpec((tm_eff, F), lambda i: (i, 0)),    # feats tile
                pl.BlockSpec((F, C_pad), lambda i: (0, 0)),     # full weight, VMEM-resident
                pl.BlockSpec((1, C_pad), lambda i: (0, 0)),     # full bias
            ],
            out_specs=pl.BlockSpec((tm_eff, C_pad), lambda i: (i, 0)),
        ),
        compiler_params=pltpu.CompilerParams(
            dimension_semantics=("parallel",),
            vmem_limit_bytes=int(min(max(_vmem_estimate(tm_eff), 32 << 20),
                                     VMEM_BUDGET)),
        ),
        cost_estimate=cost,
    )(x, w, b)

    return out[:B, :C]


class FullFTNetPallas:
    """JAX/Pallas mirror of FullFTNet's forward pass (linear head on backbone features)."""

    def __init__(self, feat_dim=256, num_classes=40, key=None):
        if key is None:
            key = jax.random.PRNGKey(0)
        kw, kb = jax.random.split(key)
        # Mirror nn.Linear's uniform(-1/sqrt(F), 1/sqrt(F)) init; store W transposed.
        bound = 1.0 / (feat_dim ** 0.5)
        self.w_t = jax.random.uniform(
            kw, (feat_dim, num_classes), jnp.float32, minval=-bound, maxval=bound
        )
        self.bias = jax.random.uniform(
            kb, (1, num_classes), jnp.float32, minval=-bound, maxval=bound
        )

    def __call__(self, feats):
        # backbone(X) is external; `feats` plays the role of model(X) output.
        return linear_head(feats, self.w_t, self.bias)


if __name__ == "__main__":
    # Small shapes consistent with the module's forward; deliberately NOT
    # multiples of the TPU tile sizes to exercise the padding path:
    # batch=12 feature vectors of dim feat_dim=256, num_classes=40.
    B, FEAT, NCLS = 12, 256, 40

    key = jax.random.PRNGKey(0)
    k_feats, k_params = jax.random.split(key)
    feats = jax.random.normal(k_feats, (B, FEAT), jnp.float32)

    net = FullFTNetPallas(feat_dim=FEAT, num_classes=NCLS, key=k_params)
    logits = net(feats)
    logits = jax.block_until_ready(logits)

    # Reference check against plain JAX with the same bf16 operand rounding.
    ref_bf16 = (
        feats.astype(jnp.bfloat16).astype(jnp.float32)
        @ net.w_t.astype(jnp.bfloat16).astype(jnp.float32)
    ) + net.bias
    ref_f32 = feats @ net.w_t + net.bias

    assert logits.shape == (B, NCLS)
    assert jnp.allclose(logits, ref_bf16, atol=1e-2, rtol=1e-2)
    assert jnp.allclose(logits, ref_f32, atol=5e-2, rtol=5e-2)

    print("KERNEL_OK")
</pallas_src>

<mosaic_0001>
module attributes {stable_mosaic.version = 11 : i64} {
  func.func @_linear_head_kernel(%arg0: i32, %arg1: memref<16x256xbf16, #tpu.memory_space<vmem>>, %arg2: memref<256x128xbf16, #tpu.memory_space<vmem>>, %arg3: memref<1x128xf32, #tpu.memory_space<vmem>>, %arg4: memref<16x128xf32, #tpu.memory_space<vmem>>) attributes {dimension_semantics = [#tpu.dimension_semantics<parallel>], iteration_bounds = array<i64: 1>, scalar_prefetch = 0 : i64, scratch_operands = 0 : i64, tpu.core_type = #tpu.core_type<tc>, window_params = [{transform_indices = @transform_0, window_bounds = array<i64: 16, 256>}, {pipeline_mode = #tpu.pipeline_mode<synchronous>, transform_indices = @transform_1, window_bounds = array<i64: 256, 128>}, {pipeline_mode = #tpu.pipeline_mode<synchronous>, transform_indices = @transform_2, window_bounds = array<i64: 1, 128>}, {transform_indices = @transform_3, window_bounds = array<i64: 16, 128>}]} {
    %c0 = arith.constant 0 : index
    %c0_0 = arith.constant 0 : index
    %0 = vector.load %arg1[%c0, %c0_0] : memref<16x256xbf16, #tpu.memory_space<vmem>>, vector<16x256xbf16>
    %c0_1 = arith.constant 0 : index
    %c0_2 = arith.constant 0 : index
    %1 = vector.load %arg2[%c0_1, %c0_2] : memref<256x128xbf16, #tpu.memory_space<vmem>>, vector<256x128xbf16>
    %cst = arith.constant dense<0.000000e+00> : vector<16x128xf32>
    %2 = tpu.matmul %0, %1, %cst {dimension_numbers = #tpu.dot_dimension_numbers<[1], [0], [0], [1], [0, 0, 1, 1], [], []>} : vector<16x256xbf16>, vector<256x128xbf16>, vector<16x128xf32> -> vector<16x128xf32>
    %c0_3 = arith.constant 0 : index
    %c0_4 = arith.constant 0 : index
    %3 = vector.load %arg3[%c0_3, %c0_4] : memref<1x128xf32, #tpu.memory_space<vmem>>, vector<1x128xf32>
    %4 = vector.broadcast %3 : vector<1x128xf32> to vector<16x128xf32>
    %5 = arith.addf %2, %4 : vector<16x128xf32>
    %c0_5 = arith.constant 0 : index
    %c0_6 = arith.constant 0 : index
    %6 = vector.load %arg4[%c0_5, %c0_6] : memref<16x128xf32, #tpu.memory_space<vmem>>, vector<16x128xf32>
    tpu.vector_store %arg4[%c0_5, %c0_6], %5 {strides = array<i32>} : memref<16x128xf32, #tpu.memory_space<vmem>>, vector<16x128xf32>,
    return
  }
  func.func @transform_0(%arg0: i32) -> (i32, i32) {
    %c0_i32 = arith.constant 0 : i32
    %c0_i32_0 = arith.constant 0 : i32
    return %arg0, %c0_i32 : i32, i32
  }
  func.func @transform_1(%arg0: i32) -> (i32, i32) {
    %c0_i32 = arith.constant 0 : i32
    %c0_i32_0 = arith.constant 0 : i32
    %c0_i32_1 = arith.constant 0 : i32
    return %c0_i32, %c0_i32_0 : i32, i32
  }
  func.func @transform_2(%arg0: i32) -> (i32, i32) {
    %c0_i32 = arith.constant 0 : i32
    %c0_i32_0 = arith.constant 0 : i32
    %c0_i32_1 = arith.constant 0 : i32
    return %c0_i32, %c0_i32_0 : i32, i32
  }
  func.func @transform_3(%arg0: i32) -> (i32, i32) {
    %c0_i32 = arith.constant 0 : i32
    %c0_i32_0 = arith.constant 0 : i32
    return %arg0, %c0_i32 : i32, i32
  }
}

</mosaic_0001>

<bundles_post_ra>
// kernel: linear_head.1
= control target key start
LH: loop header
LB: loop body
LE: loop exit
PB: predicated region body
PF: predicated region fallthrough
CT: control target
= control target key end

     0   :  { %s401_s0 = inlined_call_operand.vmem [shape: bf16[16,256], index: 0, kind: input, shape index: {}]   ;;  %s402_s1 = inlined_call_operand.vmem [shape: bf16[256,128], index: 1, kind: input, shape index: {}]   ;;  %s403_s2 = inlined_call_operand.vmem [shape: f32[1,128], index: 2, kind: input, shape index: {}]   ;;  %s404_s3 = inlined_call_operand.hbm [shape: f32[16,128], index: 3, kind: output, shape index: {}]  }
   0x1   :  { %v266_v0 = vld [vmem:[%s402_s1 + $0x40] sm:$0xff]   ;;  %v268_v2 = vld [vmem:[%s402_s1 + $0x48] sm:$0xff]   ;;  %v270_v4 = vld [vmem:[%s402_s1 + $0x50] sm:$0xff]  }
   0x2   :  { %v267_v1 = vld [vmem:[%s402_s1] sm:$0xff]   ;;  %241 = vmatprep.subr.bf16.mxu0 %v266_v0  ;;  %v269_v3 = vld [vmem:[%s402_s1 + $0x8] sm:$0xff]   ;;  %v271_v5 = vld [vmem:[%s402_s1 + $0x10] sm:$0xff]  }
   0x3   :  { %242 = vmatpush3.bf16.msra.mxu0 %v267_v1  ;;  %v272_v6 = vld [vmem:[%s402_s1 + $0x58] sm:$0xff]   ;;  %v274_v8 = vld [vmem:[%s402_s1 + $0x60] sm:$0xff]   ;;  %v276_v10 = vld [vmem:[%s402_s1 + $0x68] sm:$0xff]  }
   0x4   :  { %243 = vmatprep.subr.bf16.mxu0 %v268_v2  ;;  %v273_v7 = vld [vmem:[%s402_s1 + $0x18] sm:$0xff]   ;;  %v275_v9 = vld [vmem:[%s402_s1 + $0x20] sm:$0xff]  }
   0x5   :  { %v284_v11 = vld [vmem:[%s401_s0 + $0x4] ss:$8 sps:$4 sm:$0xff]  }
   0x7   :  { %244 = vmatpush3.bf16.msra.mxu0 %v269_v3 }
   0x8   :  { %245 = vmatprep.subr.bf16.mxu0 %v270_v4 }
   0xb   :  { %246 = vmatpush3.bf16.msra.mxu0 %v271_v5 }
   0xc   :  { %247 = vmatprep.subr.bf16.mxu0 %v272_v6 }
   0xf   :  { %248 = vmatpush3.bf16.msra.mxu0 %v273_v7 }
  0x10   :  { %249 = vmatprep.subr.bf16.mxu0 %v274_v8 }
  0x11   :  { %8 = vsyncpa [#allocation3], 0  ;;  %v277_v12 = vld [vmem:[%s402_s1 + $0x28] sm:$0xff]   ;;  %195 = vmatprep.mubr.bf16.mxu0 %v284_v11  ;;  %v278_v13 = vld [vmem:[%s402_s1 + $0x70] sm:$0xff]   ;;  %s309_s23 = smov [#allocation2]  }
  0x12   :  { %v279_v14 = vld [vmem:[%s402_s1 + $0x30] sm:$0xff]   ;;  %v280_v15 = vld [vmem:[%s402_s1 + $0x78] sm:$0xff]   ;;  %v282_v17 = vld [vmem:[%s401_s0] ss:$8 sps:$4 sm:$0xff]   ;;  %s211_s24 = sshll.u32 %s309_s23, 4  ;;  %s212_s24 = int_to_ptr.vmem [resolvable:$true] %s211_s24 }
  0x13   :  { %250 = vmatpush3.bf16.msra.mxu0 %v275_v9  ;;  %v281_v16 = vld [vmem:[%s402_s1 + $0x38] sm:$0xff]   ;;  %v222_v19 = vld [vmem:[%s403_s2] ss:$0 sm:$0xff]  ;;  %s285_s0 = scalar_lea.vmem %s212_s24, 256  ;;  %p290_p1 = scmp.lt.s32.totalorder %s212_s24, %s212_s24 }
  0x14   :  { %251 = vmatprep.subr.bf16.mxu0 %v276_v10  ;;  %p286_p0 = scmp.ne.s32.totalorder %s212_s24, %s285_s0  ;;  %p291_p2 = scmp.lt.s32.totalorder %s285_s0, %s285_s0 }
  0x16   :  { %p292_p3 = por %p291_p2, %p290_p1 }
  0x17   :  { %252 = vmatpush3.bf16.msra.mxu0 %v277_v12 }
  0x18   :  { %253 = vmatprep.subr.bf16.mxu0 %v278_v13  ;;  %p293_p4 = pnand %p292_p3, %p286_p0 }
  0x1b   :  { %254 = vmatpush3.bf16.msra.mxu0 %v279_v14 }
  0x1c   :  { %255 = vmatprep.subr.bf16.mxu0 %v280_v15 }
  0x1f   :  { %256 = vmatpush3.bf16.msra.mxu0 %v281_v16 }
  0x22   :  { %196 = vmatmul.mubr.bf16.vlgmr.msra.gmra.mrb[0].mxu0 %v282_v17 }
  0xf5   :  { %v257_v18 = vpop.f32.mrb[0].mxu0 }
  0xf6   :  { %v258_v20 = vpop.f32.mrb[1].mxu0 }
  0xf7   :  { %v259_v21 = vadd.f32 %v258_v20, %v257_v18  ;;  %v260_v22 = vpop.f32.mrb[2].mxu0 }
  0xf8   :  { %v261_v23 = vpop.f32.mrb[3].mxu0 }
  0xf9   :  { %v198_v24 = vadd.f32 %v259_v21, %v222_v19  ;;  %v262_v25 = vadd.f32 %v261_v23, %v260_v22 }
  0xfb   :  { %204 = vst [vmem:[#allocation2] sm:$0xff] %v198_v24  ;;  %v201_v26 = vadd.f32 %v262_v25, %v222_v19 }
  0xfd   :  { %205 = vst [vmem:[#allocation2 + $0x8] sm:$0xff] %v201_v26 }
  0xfe   :  { %296 = shalt.err (!%p293_p4)
}
  0xff   :  { %s297_s25 = scalar_lea.hbm %s404_s3, 256 }
 0x100   :  { %p298_p5 = scmp.ne.s32.totalorder %s404_s3, %s297_s25  ;;  %p301_p6 = scmp.lt.u32.totalorder %s297_s25, %s404_s3 }
 0x102   :  { %p303_p7 = pnand %p301_p6, %p298_p5 }
 0x104   :  { %306 = shalt.err (!%p303_p7)
}
 0x105   :  { %s310_s30 = smov 128   ;;  %s311_s4 = smov 8  }
 0x106   :  { %217 = dma.vmem_to_hbm [thread:$0]  %s212_s24, 256, %s404_s3, [#allocation3], %s310_s30, %s310_s30, %s311_s4  }
 0x107   :  { %307 = dma.done.wait [#allocation3], 256  }
 0x108   :  { %308 = vsyncadd [#allocation3], 4294967040 }
 0x109   :  { %221 = vsyncpa [#allocation3], 1 }

</bundles_post_ra>
